<compile_context>
chip_gen: v7x
topology: tpu7x:2x2x1
jax: 0.10.0
libtpu: 0.0.40
codegen_flags: <defaults>
</compile_context>

<pallas_src>
import functools

import jax
import jax.numpy as jnp
from jax.experimental import pallas as pl
from jax.experimental.pallas import tpu as pltpu

IN_FEATURES = 784
HIDDEN = 256
OUT_FEATURES = 10
N_PAD = 128   # lane-dense output width; valid logits live in columns [:10]


def _round_up(x, m):
    return (x + m - 1) // m * m


def _mlp_kernel(x_ref, w1_ref, b1_ref, w2_ref, b2_ref, o_ref):
    # In-kernel cast: x arrives as f32 straight from HBM, cast to bf16 for MXU.
    x = x_ref[...].astype(jnp.bfloat16)

    # Hidden layer: (TM, 784)bf16 @ (784, 256)bf16 -> f32 acc, + bias, sigmoid.
    h = jnp.dot(x, w1_ref[...], preferred_element_type=jnp.float32)
    h = h + b1_ref[...]
    # sigmoid(h) == 0.5 * (1 + tanh(h/2)): single EUP op, no exp overflow edge.
    h = 0.5 * (1.0 + jnp.tanh(0.5 * h))

    # Output layer: (TM, 256)bf16 @ (256, 128)bf16 -> f32 acc, + bias.
    logits = jnp.dot(h.astype(jnp.bfloat16), w2_ref[...],
                     preferred_element_type=jnp.float32)
    logits = logits + b2_ref[...]        # padded columns carry a -1e30 bias

    # Softmax over the lane-dense 128-wide feature axis, max-stabilized.
    m = jnp.max(logits, axis=-1, keepdims=True)
    e = jnp.exp(logits - m)              # padded cols -> exp(~-1e30) == 0
    denom = jnp.sum(e, axis=-1, keepdims=True)
    inv = 1.0 / denom                    # exact recip of (tm,1): rows sum to 1
    o_ref[...] = (e * inv).astype(o_ref.dtype)


def prepare_params(w1, b1, w2, b2):
    """One-time layout plumbing (hoisted out of the per-call hot path).

    w1: (784, 256), b1: (256,), w2: (256, 10), b2: (10,)  -- all f32,
    stored as (in, out) so the kernel computes x @ W + b.
    """
    w1_p = w1.astype(jnp.bfloat16)                                   # (784, 256)
    b1_p = b1.reshape(1, HIDDEN).astype(jnp.float32)                 # (1, 256)
    w2_p = jnp.zeros((HIDDEN, N_PAD), jnp.bfloat16)
    w2_p = w2_p.at[:, :OUT_FEATURES].set(w2.astype(jnp.bfloat16))    # (256, 128)
    b2_p = jnp.full((1, N_PAD), -1e30, jnp.float32)
    b2_p = b2_p.at[:, :OUT_FEATURES].set(
        b2.reshape(1, OUT_FEATURES).astype(jnp.float32))             # (1, 128)
    return w1_p, b1_p, w2_p, b2_p


@functools.partial(jax.jit, static_argnames=("block_m",))
def network_forward(x, w1_p, b1_p, w2_p, b2_p, *, block_m=2048):
    """Forward pass. x: (B, 784) f32. Returns (B, 10) f32 probabilities."""
    B = x.shape[0]

    # Batch tiling: big tiles to amortize per-step overhead; when the whole
    # batch fits in one block, split into >=2 tiles so the "parallel" axis can
    # shard across the two v7x TensorCores (harmless on v5e/v6e).
    if B <= block_m:
        tm = max(8, _round_up(pl.cdiv(B, 2), 8))
    else:
        tm = block_m
    b_pad = _round_up(B, tm)
    grid_m = b_pad // tm
    if b_pad != B:
        x = jnp.pad(x, ((0, b_pad - B), (0, 0)))   # batch-dim pad only (f32)

    flops = 2 * b_pad * (IN_FEATURES * HIDDEN + HIDDEN * N_PAD)
    transcendentals = b_pad * (HIDDEN + N_PAD)     # tanh + softmax exp
    bytes_accessed = (b_pad * IN_FEATURES * 4      # x f32 in
                      + w1_p.size * 2 + w2_p.size * 2
                      + b1_p.size * 4 + b2_p.size * 4
                      + b_pad * N_PAD * 2)         # bf16 out

    resident = functools.partial(pl.BlockSpec, pipeline_mode=pl.Buffered(1))

    out_p = pl.pallas_call(
        _mlp_kernel,
        out_shape=jax.ShapeDtypeStruct((b_pad, N_PAD), jnp.bfloat16),
        grid_spec=pltpu.PrefetchScalarGridSpec(
            num_scalar_prefetch=0,
            grid=(grid_m,),
            in_specs=[
                pl.BlockSpec((tm, IN_FEATURES), lambda i: (i, 0)),     # x tile, pipelined
                resident((IN_FEATURES, HIDDEN), lambda i: (0, 0)),     # w1 resident, 1-buf
                resident((1, HIDDEN), lambda i: (0, 0)),               # b1 resident
                resident((HIDDEN, N_PAD), lambda i: (0, 0)),           # w2 resident
                resident((1, N_PAD), lambda i: (0, 0)),                # b2 resident
            ],
            out_specs=pl.BlockSpec((tm, N_PAD), lambda i: (i, 0)),
        ),
        compiler_params=pltpu.CompilerParams(
            dimension_semantics=("parallel",),     # shard batch tiles across TCs
            vmem_limit_bytes=32 * 1024 * 1024,     # ~19 MB peak at tm=2048; v7x-safe
        ),
        cost_estimate=pl.CostEstimate(
            flops=flops,
            transcendentals=transcendentals,
            bytes_accessed=bytes_accessed,
        ),
    )(x, w1_p, b1_p, w2_p, b2_p)

    return out_p[:B, :OUT_FEATURES].astype(jnp.float32)


def init_params(key):
    """Deterministic init matching nn.Linear default (U[-1/sqrt(fan_in), +])."""
    k1, k2, k3, k4 = jax.random.split(key, 4)
    lim1 = 1.0 / jnp.sqrt(jnp.float32(IN_FEATURES))
    lim2 = 1.0 / jnp.sqrt(jnp.float32(HIDDEN))
    # Stored as (in, out): kernel computes x @ W + b (== PyTorch x @ W.T + b).
    w1 = jax.random.uniform(k1, (IN_FEATURES, HIDDEN), jnp.float32, -lim1, lim1)
    b1 = jax.random.uniform(k2, (HIDDEN,), jnp.float32, -lim1, lim1)
    w2 = jax.random.uniform(k3, (HIDDEN, OUT_FEATURES), jnp.float32, -lim2, lim2)
    b2 = jax.random.uniform(k4, (OUT_FEATURES,), jnp.float32, -lim2, lim2)
    return w1, b1, w2, b2


if __name__ == "__main__":
    key = jax.random.PRNGKey(0)
    k_x, k_p = jax.random.split(key)

    B = 8  # small demo batch
    x = jax.random.normal(k_x, (B, IN_FEATURES), jnp.float32)
    w1, b1, w2, b2 = init_params(k_p)

    params = prepare_params(w1, b1, w2, b2)   # one-time padding / casts
    out = network_forward(x, *params)
    out = jax.block_until_ready(out)
    assert out.shape == (B, OUT_FEATURES)

    # Sanity 1: softmax rows sum to ~1 (exact normalization; bf16 rounding only).
    row_sums = jnp.sum(out, axis=1)
    assert bool(jnp.all(jnp.abs(row_sums - 1.0) < 1e-2)), row_sums

    # Sanity 2: matches a pure-JAX f32 reference of the same forward pass.
    h_ref = jax.nn.sigmoid(x @ w1 + b1[None, :])
    ref = jax.nn.softmax(h_ref @ w2 + b2[None, :], axis=1)
    assert bool(jnp.all(jnp.abs(out - ref) < 3e-2)), jnp.max(jnp.abs(out - ref))

    print("KERNEL_OK")
</pallas_src>

<mosaic_0001>
module attributes {stable_mosaic.version = 11 : i64} {
  func.func @_mlp_kernel(%arg0: i32, %arg1: memref<8x784xf32, #tpu.memory_space<vmem>>, %arg2: memref<784x256xbf16, #tpu.memory_space<vmem>>, %arg3: memref<1x256xf32, #tpu.memory_space<vmem>>, %arg4: memref<256x128xbf16, #tpu.memory_space<vmem>>, %arg5: memref<1x128xf32, #tpu.memory_space<vmem>>, %arg6: memref<8x128xbf16, #tpu.memory_space<vmem>>) attributes {dimension_semantics = [#tpu.dimension_semantics<parallel>], iteration_bounds = array<i64: 1>, scalar_prefetch = 0 : i64, scratch_operands = 0 : i64, tpu.core_type = #tpu.core_type<tc>, window_params = [{transform_indices = @transform_0, window_bounds = array<i64: 8, 784>}, {pipeline_mode = #tpu.pipeline_mode<synchronous>, transform_indices = @transform_1, window_bounds = array<i64: 784, 256>}, {pipeline_mode = #tpu.pipeline_mode<synchronous>, transform_indices = @transform_2, window_bounds = array<i64: 1, 256>}, {pipeline_mode = #tpu.pipeline_mode<synchronous>, transform_indices = @transform_3, window_bounds = array<i64: 256, 128>}, {pipeline_mode = #tpu.pipeline_mode<synchronous>, transform_indices = @transform_4, window_bounds = array<i64: 1, 128>}, {transform_indices = @transform_5, window_bounds = array<i64: 8, 128>}]} {
    %c0 = arith.constant 0 : index
    %c0_0 = arith.constant 0 : index
    %0 = vector.load %arg1[%c0, %c0_0] : memref<8x784xf32, #tpu.memory_space<vmem>>, vector<8x784xf32>
    %1 = arith.truncf %0 : vector<8x784xf32> to vector<8x784xbf16>
    %c0_1 = arith.constant 0 : index
    %c0_2 = arith.constant 0 : index
    %2 = vector.load %arg2[%c0_1, %c0_2] : memref<784x256xbf16, #tpu.memory_space<vmem>>, vector<784x256xbf16>
    %cst = arith.constant dense<0.000000e+00> : vector<8x256xf32>
    %3 = tpu.matmul %1, %2, %cst {dimension_numbers = #tpu.dot_dimension_numbers<[1], [0], [0], [1], [0, 0, 1, 1], [], []>} : vector<8x784xbf16>, vector<784x256xbf16>, vector<8x256xf32> -> vector<8x256xf32>
    %c0_3 = arith.constant 0 : index
    %c0_4 = arith.constant 0 : index
    %4 = vector.load %arg3[%c0_3, %c0_4] : memref<1x256xf32, #tpu.memory_space<vmem>>, vector<1x256xf32>
    %5 = vector.broadcast %4 : vector<1x256xf32> to vector<8x256xf32>
    %6 = arith.addf %3, %5 : vector<8x256xf32>
    %cst_5 = arith.constant 5.000000e-01 : f32
    %7 = vector.broadcast %cst_5 : f32 to vector<8x256xf32>
    %8 = arith.mulf %7, %6 : vector<8x256xf32>
    %9 = math.tanh %8 : vector<8x256xf32>
    %cst_6 = arith.constant 1.000000e+00 : f32
    %10 = vector.broadcast %cst_6 : f32 to vector<8x256xf32>
    %11 = arith.addf %10, %9 : vector<8x256xf32>
    %cst_7 = arith.constant 5.000000e-01 : f32
    %12 = vector.broadcast %cst_7 : f32 to vector<8x256xf32>
    %13 = arith.mulf %12, %11 : vector<8x256xf32>
    %14 = arith.truncf %13 : vector<8x256xf32> to vector<8x256xbf16>
    %c0_8 = arith.constant 0 : index
    %c0_9 = arith.constant 0 : index
    %15 = vector.load %arg4[%c0_8, %c0_9] : memref<256x128xbf16, #tpu.memory_space<vmem>>, vector<256x128xbf16>
    %cst_10 = arith.constant dense<0.000000e+00> : vector<8x128xf32>
    %16 = tpu.matmul %14, %15, %cst_10 {dimension_numbers = #tpu.dot_dimension_numbers<[1], [0], [0], [1], [0, 0, 1, 1], [], []>} : vector<8x256xbf16>, vector<256x128xbf16>, vector<8x128xf32> -> vector<8x128xf32>
    %c0_11 = arith.constant 0 : index
    %c0_12 = arith.constant 0 : index
    %17 = vector.load %arg5[%c0_11, %c0_12] : memref<1x128xf32, #tpu.memory_space<vmem>>, vector<1x128xf32>
    %18 = vector.broadcast %17 : vector<1x128xf32> to vector<8x128xf32>
    %19 = arith.addf %16, %18 : vector<8x128xf32>
    %cst_13 = arith.constant dense<0xFF800000> : vector<8xf32>
    %20 = vector.multi_reduction <maximumf>, %19, %cst_13 [1] : vector<8x128xf32> to vector<8xf32>
    %21 = vector.shape_cast %20 : vector<8xf32> to vector<8x1xf32>
    %22 = vector.broadcast %21 : vector<8x1xf32> to vector<8x128xf32>
    %23 = arith.subf %19, %22 : vector<8x128xf32>
    %24 = math.exp %23 : vector<8x128xf32>
    %cst_14 = arith.constant dense<0.000000e+00> : vector<8xf32>
    %25 = vector.multi_reduction <add>, %24, %cst_14 [1] : vector<8x128xf32> to vector<8xf32>
    %26 = vector.shape_cast %25 : vector<8xf32> to vector<8x1xf32>
    %cst_15 = arith.constant 1.000000e+00 : f32
    %27 = vector.broadcast %cst_15 : f32 to vector<8x1xf32>
    %28 = arith.divf %27, %26 : vector<8x1xf32>
    %29 = vector.broadcast %28 : vector<8x1xf32> to vector<8x128xf32>
    %30 = arith.mulf %24, %29 : vector<8x128xf32>
    %31 = arith.truncf %30 : vector<8x128xf32> to vector<8x128xbf16>
    %c0_16 = arith.constant 0 : index
    %c0_17 = arith.constant 0 : index
    %32 = vector.load %arg6[%c0_16, %c0_17] : memref<8x128xbf16, #tpu.memory_space<vmem>>, vector<8x128xbf16>
    tpu.vector_store %arg6[%c0_16, %c0_17], %31 {strides = array<i32>} : memref<8x128xbf16, #tpu.memory_space<vmem>>, vector<8x128xbf16>,
    return
  }
  func.func @transform_0(%arg0: i32) -> (i32, i32) {
    %c0_i32 = arith.constant 0 : i32
    %c0_i32_0 = arith.constant 0 : i32
    return %arg0, %c0_i32 : i32, i32
  }
  func.func @transform_1(%arg0: i32) -> (i32, i32) {
    %c0_i32 = arith.constant 0 : i32
    %c0_i32_0 = arith.constant 0 : i32
    %c0_i32_1 = arith.constant 0 : i32
    return %c0_i32, %c0_i32_0 : i32, i32
  }
  func.func @transform_2(%arg0: i32) -> (i32, i32) {
    %c0_i32 = arith.constant 0 : i32
    %c0_i32_0 = arith.constant 0 : i32
    %c0_i32_1 = arith.constant 0 : i32
    return %c0_i32, %c0_i32_0 : i32, i32
  }
  func.func @transform_3(%arg0: i32) -> (i32, i32) {
    %c0_i32 = arith.constant 0 : i32
    %c0_i32_0 = arith.constant 0 : i32
    %c0_i32_1 = arith.constant 0 : i32
    return %c0_i32, %c0_i32_0 : i32, i32
  }
  func.func @transform_4(%arg0: i32) -> (i32, i32) {
    %c0_i32 = arith.constant 0 : i32
    %c0_i32_0 = arith.constant 0 : i32
    %c0_i32_1 = arith.constant 0 : i32
    return %c0_i32, %c0_i32_0 : i32, i32
  }
  func.func @transform_5(%arg0: i32) -> (i32, i32) {
    %c0_i32 = arith.constant 0 : i32
    %c0_i32_0 = arith.constant 0 : i32
    return %arg0, %c0_i32 : i32, i32
  }
}

</mosaic_0001>

<bundles_post_ra>
// kernel: network_forward.1
= control target key start
LH: loop header
LB: loop body
LE: loop exit
PB: predicated region body
PF: predicated region fallthrough
CT: control target
= control target key end

     0   :  { %10 = vsyncpa [#allocation3], 0  ;;  %s1525_s0 = inlined_call_operand.hbm [shape: f32[8,784], index: 0, kind: input, shape index: {}]   ;;  %s1526_s1 = inlined_call_operand.hbm [shape: bf16[784,256], index: 1, kind: input, shape index: {}]   ;;  %s1527_s2 = inlined_call_operand.vmem [shape: f32[1,256], index: 2, kind: input, shape index: {}]   ;;  %s1528_s3 = inlined_call_operand.hbm [shape: bf16[256,128], index: 3, kind: input, shape index: {}]   ;;  %s1529_s4 = inlined_call_operand.vmem [shape: f32[1,128], index: 4, kind: input, shape index: {}]   ;;  %s1530_s5 = inlined_call_operand.vmem [shape: bf16[8,128], index: 5, kind: output, shape index: {}]  }
   0x1   :  { %11 = vsyncpa [#allocation5], 0  ;;  %s1442_s18 = smov [#allocation4]   ;;  %s1372_s22 = scalar_lea.hbm %s1526_s1, 12544 }
   0x2   :  { %s27_s19 = sshll.u32 %s1442_s18, 4  ;;  %p1373_p0 = scmp.ne.s32.totalorder %s1526_s1, %s1372_s22  ;;  %s28_s19 = int_to_ptr.vmem [resolvable:$true] %s27_s19 }
   0x3   :  { %p1376_p1 = scmp.lt.u32.totalorder %s1372_s22, %s1526_s1 }
   0x5   :  { %p1378_p2 = pnand %p1376_p1, %p1373_p0 }
   0x7   :  { %1381 = shalt.err (!%p1378_p2)
}
   0x8   :  { %s1382_s27 = scalar_lea.vmem %s28_s19, 12544  ;;  %p1387_p4 = scmp.lt.s32.totalorder %s28_s19, %s28_s19 }
   0x9   :  { %p1383_p3 = scmp.ne.s32.totalorder %s28_s19, %s1382_s27  ;;  %p1388_p5 = scmp.lt.s32.totalorder %s1382_s27, %s1382_s27 }
   0xb   :  { %p1389_p6 = por %p1388_p5, %p1387_p4 }
   0xd   :  { %p1390_p7 = pnand %p1389_p6, %p1383_p3 }
   0xf   :  { %1393 = shalt.err (!%p1390_p7)
}
  0x10   :  { %s1443_s28 = smov 128   ;;  %s1444_s29 = smov 8  }
  0x11   :  { %33 = dma.hbm_to_vmem [thread:$0]  %s1526_s1, 12544, %s28_s19, [#allocation5], %s1443_s28, %s1443_s28, %s1444_s29  }
  0x12   :  { %s1445_s7 = smov [#allocation2]   ;;  %s1446_s9 = smov [#allocation6]  }
  0x13   :  { %s18_s8 = sshll.u32 %s1445_s7, 4  ;;  %s41_s10 = sshll.u32 %s1446_s9, 4  ;;  %s19_s8 = int_to_ptr.vmem [resolvable:$true] %s18_s8  ;;  %s42_s10 = int_to_ptr.vmem [resolvable:$true] %s41_s10 }
  0x14   :  { %s1394_s13 = scalar_lea.hbm %s1525_s0, 896 }
  0x15   :  { %p1395_p8 = scmp.ne.s32.totalorder %s1525_s0, %s1394_s13  ;;  %p1398_p9 = scmp.lt.u32.totalorder %s1394_s13, %s1525_s0 }
  0x17   :  { %p1400_p10 = pnand %p1398_p9, %p1395_p8 }
  0x19   :  { %1403 = shalt.err (!%p1400_p10)
}
  0x1a   :  { %s1404_s1 = scalar_lea.vmem %s19_s8, 896  ;;  %p1409_p12 = scmp.lt.s32.totalorder %s19_s8, %s19_s8 }
  0x1b   :  { %p1405_p11 = scmp.ne.s32.totalorder %s19_s8, %s1404_s1  ;;  %p1410_p13 = scmp.lt.s32.totalorder %s1404_s1, %s1404_s1 }
  0x1d   :  { %p1411_p0 = por %p1410_p13, %p1409_p12 }
  0x1f   :  { %p1412_p1 = pnand %p1411_p0, %p1405_p11 }
  0x21   :  { %1415 = shalt.err (!%p1412_p1)
}
  0x22   :  { %21 = dma.hbm_to_vmem [thread:$0]  %s1525_s0, 896, %s19_s8, [#allocation3]  }
  0x23   :  { %s1416_s22 = scalar_lea.hbm %s1528_s3, 2048 }
  0x24   :  { %p1417_p2 = scmp.ne.s32.totalorder %s1528_s3, %s1416_s22  ;;  %p1420_p3 = scmp.lt.u32.totalorder %s1416_s22, %s1528_s3 }
  0x26   :  { %p1422_p4 = pnand %p1420_p3, %p1417_p2 }
  0x28   :  { %1425 = shalt.err (!%p1422_p4)
}
  0x29   :  { %s1426_s27 = scalar_lea.vmem %s42_s10, 2048  ;;  %p1431_p6 = scmp.lt.s32.totalorder %s42_s10, %s42_s10 }
  0x2a   :  { %p1427_p5 = scmp.ne.s32.totalorder %s42_s10, %s1426_s27  ;;  %p1432_p7 = scmp.lt.s32.totalorder %s1426_s27, %s1426_s27 }
  0x2c   :  { %p1433_p8 = por %p1432_p7, %p1431_p6 }
  0x2e   :  { %p1434_p9 = pnand %p1433_p8, %p1427_p5 }
  0x30   :  { %1437 = shalt.err (!%p1434_p9)
}
  0x31   :  { %s1447_s0 = smov 64   ;;  %s1448_s28 = smov 4  }
  0x32   :  { %47 = dma.hbm_to_vmem [thread:$0]  %s1528_s3, 2048, %s42_s10, [#allocation5], %s1447_s0, %s1447_s0, %s1448_s28  }
  0x33   :  { %1438 = dma.done.wait [#allocation3], 896  }
  0x34   :  { %1439 = vsyncadd [#allocation3], 4294966400 }
  0x35   :  { %1440 = dma.done.wait [#allocation5], 14592  }
  0x36   :  { %1441 = vsyncadd [#allocation5], 4294952704  ;;  %v1201_v0 = vld [vmem:[#allocation4 + $0x104] ss:$8 sps:$4 sm:$0xff]   ;;  %v1203_v1 = vld [vmem:[#allocation4 + $0x100] ss:$8 sps:$4 sm:$0xff]  }
  0x37   :  { %719 = vmatprep.subr.bf16.mxu0 %v1201_v0  ;;  %v1204_v2 = vld [vmem:[#allocation4 + $0x114] ss:$8 sps:$4 sm:$0xff]   ;;  %v1206_v3 = vld [vmem:[#allocation4 + $0x110] ss:$8 sps:$4 sm:$0xff]   ;;  %v1207_v4 = vld [vmem:[#allocation4 + $0x124] ss:$8 sps:$4 sm:$0xff]  }
  0x38   :  { %720 = vmatpush1.bf16.msra.mxu0 %v1203_v1  ;;  %v1209_v5 = vld [vmem:[#allocation4 + $0x120] ss:$8 sps:$4 sm:$0xff]   ;;  %v1210_v6 = vld [vmem:[#allocation4 + $0x134] ss:$8 sps:$4 sm:$0xff]   ;;  %v1212_v7 = vld [vmem:[#allocation4 + $0x130] ss:$8 sps:$4 sm:$0xff]  }
  0x39   :  { %721 = vmatprep.subr.bf16.mxu0 %v1204_v2  ;;  %v1213_v8 = vld [vmem:[#allocation4 + $0x144] ss:$8 sps:$4 sm:$0xff]   ;;  %v1215_v9 = vld [vmem:[#allocation4 + $0x140] ss:$8 sps:$4 sm:$0xff]   ;;  %v1216_v10 = vld [vmem:[#allocation4 + $0x154] ss:$8 sps:$4 sm:$0xff]  }
  0x3a   :  { %v1218_v11 = vld [vmem:[#allocation4 + $0x150] ss:$8 sps:$4 sm:$0xff]   ;;  %v1243_v12 = vld [vmem:[#allocation4 + $0x4] ss:$8 sps:$4 sm:$0xff]   ;;  %v1245_v13 = vld [vmem:[#allocation4] ss:$8 sps:$4 sm:$0xff]  }
  0x3b   :  { %v1219_v14 = vld [vmem:[#allocation4 + $0x164] ss:$8 sps:$4 sm:$0xff]   ;;  %678 = vmatprep.subr.bf16.mxu1 %v1243_v12  ;;  %v1249_v15 = vld [vmem:[#allocation4 + $0x14] ss:$8 sps:$4 sm:$0xff]   ;;  %v1251_v16 = vld [vmem:[#allocation4 + $0x10] ss:$8 sps:$4 sm:$0xff]  }
  0x3c   :  { %722 = vmatpush1.bf16.msra.mxu0 %v1206_v3  ;;  %679 = vmatpush1.bf16.msra.mxu1 %v1245_v13  ;;  %v1221_v17 = vld [vmem:[#allocation4 + $0x160] ss:$8 sps:$4 sm:$0xff]   ;;  %v1222_v18 = vld [vmem:[#allocation4 + $0x174] ss:$8 sps:$4 sm:$0xff]   ;;  %v1255_v19 = vld [vmem:[#allocation4 + $0x24] ss:$8 sps:$4 sm:$0xff]  }
  0x3d   :  { %723 = vmatprep.subr.bf16.mxu0 %v1207_v4  ;;  %680 = vmatprep.subr.bf16.mxu1 %v1249_v15  ;;  %v63_v20 = vld [vmem:[#allocation2 + $0x18] sm:$0xff]  ;;  %v1224_v23 = vld [vmem:[#allocation4 + $0x170] ss:$8 sps:$4 sm:$0xff]   ;;  %v1261_v25 = vld [vmem:[#allocation4 + $0x34] ss:$8 sps:$4 sm:$0xff]   ;;  %vm674_vm0 = vcmask 130048  }
  0x3e   :  { %v1257_v21 = vld [vmem:[#allocation4 + $0x20] ss:$8 sps:$4 sm:$0xff]   ;;  %v70_v22 = vpack.c.bf16 %v63_v20, %v63_v20  ;;  %v1225_v24 = vld [vmem:[#allocation4 + $0x184] ss:$8 sps:$4 sm:$0xff]   ;;  %v1263_v27 = vld [vmem:[#allocation4 + $0x30] ss:$8 sps:$4 sm:$0xff]  }
  0x3f   :  { %v1227_v26 = vld [vmem:[#allocation4 + $0x180] ss:$8 sps:$4 sm:$0xff]   ;;  %v1267_v28 = vld [vmem:[#allocation4 + $0x44] ss:$8 sps:$4 sm:$0xff]   ;;  %v1228_v29 = vld [vmem:[#allocation4 + $0x194] ss:$8 sps:$4 sm:$0xff]  }
  0x40   :  { %724 = vmatpush1.bf16.msra.mxu0 %v1209_v5  ;;  %681 = vmatpush1.bf16.msra.mxu1 %v1251_v16  ;;  %v1230_v30 = vld [vmem:[#allocation4 + $0x190] ss:$8 sps:$4 sm:$0xff]   ;;  %v1269_v31 = vld [vmem:[#allocation4 + $0x40] ss:$8 sps:$4 sm:$0xff]   ;;  %v1273_v32 = vld [vmem:[#allocation4 + $0x54] ss:$8 sps:$4 sm:$0xff]  }
  0x41   :  { %725 = vmatprep.subr.bf16.mxu0 %v1210_v6  ;;  %682 = vmatprep.subr.bf16.mxu1 %v1255_v19  ;;  %v1231_v33 = vld [vmem:[#allocation4 + $0x1a4] ss:$8 sps:$4 sm:$0xff]   ;;  %v1233_v34 = vld [vmem:[#allocation4 + $0x1a0] ss:$8 sps:$4 sm:$0xff]   ;;  %v1275_v35 = vld [vmem:[#allocation4 + $0x50] ss:$8 sps:$4 sm:$0xff]  }
  0x42   :  { %751 = vmatprep.mubr.bf16.mxu0 %v70_v22  ;;  %v1279_v36 = vld [vmem:[#allocation4 + $0x64] ss:$8 sps:$4 sm:$0xff]   ;;  %v1234_v37 = vld [vmem:[#allocation4 + $0x1b4] ss:$8 sps:$4 sm:$0xff]   ;;  %v1236_v38 = vld [vmem:[#allocation4 + $0x1b0] ss:$8 sps:$4 sm:$0xff]  }
  0x43   :  { %v1281_v39 = vld [vmem:[#allocation4 + $0x60] ss:$8 sps:$4 sm:$0xff]   ;;  %v1285_v40 = vld [vmem:[#allocation4 + $0x74] ss:$8 sps:$4 sm:$0xff]   ;;  %v1237_v41 = vld [vmem:[#allocation4 + $0x1c4] ss:$8 sps:$4 sm:$0xff]  }
  0x44   :  { %726 = vmatpush1.bf16.msra.mxu0 %v1212_v7  ;;  %683 = vmatpush1.bf16.msra.mxu1 %v1257_v21  ;;  %v1239_v42 = vld [vmem:[#allocation4 + $0x1c0] ss:$8 sps:$4 sm:$0xff]   ;;  %v1287_v43 = vld [vmem:[#allocation4 + $0x70] ss:$8 sps:$4 sm:$0xff]   ;;  %v1291_v44 = vld [vmem:[#allocation4 + $0x84] ss:$8 sps:$4 sm:$0xff]  }
  0x45   :  { %727 = vmatprep.subr.bf16.mxu0 %v1213_v8  ;;  %684 = vmatprep.subr.bf16.mxu1 %v1261_v25  ;;  %v1240_v45 = vld [vmem:[#allocation4 + $0x1d4] ss:$8 sps:$4 sm:$0xff]   ;;  %v1242_v46 = vld [vmem:[#allocation4 + $0x1d0] ss:$8 sps:$4 sm:$0xff]   ;;  %v1293_v47 = vld [vmem:[#allocation4 + $0x80] ss:$8 sps:$4 sm:$0xff]  }
  0x46   :  { %v1297_v48 = vld [vmem:[#allocation4 + $0x94] ss:$8 sps:$4 sm:$0xff]   ;;  %v1246_v49 = vld [vmem:[#allocation4 + $0x1e4] ss:$8 sps:$4 sm:$0xff]   ;;  %v1248_v50 = vld [vmem:[#allocation4 + $0x1e0] ss:$8 sps:$4 sm:$0xff]  }
  0x47   :  { %v1299_v51 = vld [vmem:[#allocation4 + $0x90] ss:$8 sps:$4 sm:$0xff]   ;;  %v1303_v52 = vld [vmem:[#allocation4 + $0xa4] ss:$8 sps:$4 sm:$0xff]   ;;  %v1252_v53 = vld [vmem:[#allocation4 + $0x1f4] ss:$8 sps:$4 sm:$0xff]  }
  0x48   :  { %728 = vmatpush1.bf16.msra.mxu0 %v1215_v9  ;;  %685 = vmatpush1.bf16.msra.mxu1 %v1263_v27  ;;  %v1254_v54 = vld [vmem:[#allocation4 + $0x1f0] ss:$8 sps:$4 sm:$0xff]   ;;  %v1305_v56 = vld [vmem:[#allocation4 + $0xa0] ss:$8 sps:$4 sm:$0xff]   ;;  %v1309_v57 = vld [vmem:[#allocation4 + $0xb4] ss:$8 sps:$4 sm:$0xff]  }
  0x49   :  { %729 = vmatprep.subr.bf16.mxu0 %v1216_v10  ;;  %686 = vmatprep.subr.bf16.mxu1 %v1267_v28  ;;  %v62_v55 = vld [vmem:[#allocation2 + $0x10] sm:$0xff]  ;;  %v1260_v58 = vld [vmem:[#allocation4 + $0x204] ss:$8 sps:$4 sm:$0xff]   ;;  %v61_v61 = vld [vmem:[#allocation2 + $0x8] sm:$0xff]  ;;  %v1449_v25 = vmov 0  }
  0x4a   :  { %v69_v59 = vpack.c.bf16 %v62_v55, %v62_v55  ;;  %v1311_v60 = vld [vmem:[#allocation4 + $0xb0] ss:$8 sps:$4 sm:$0xff]   ;;  %v1258_v62 = vld [vmem:[#allocation4 + $0x200] ss:$8 sps:$4 sm:$0xff]   ;;  %v1315_v63 = vld [vmem:[#allocation4 + $0xc4] ss:$8 sps:$4 sm:$0xff]   ;;  %v68_v0 = vpack.c.bf16 %v61_v61, %v61_v61 }
  0x4b   :  { %v1266_v1 = vld [vmem:[#allocation4 + $0x214] ss:$8 sps:$4 sm:$0xff]   ;;  %v1317_v2 = vld [vmem:[#allocation4 + $0xc0] ss:$8 sps:$4 sm:$0xff]   ;;  %v1264_v4 = vld [vmem:[#allocation4 + $0x210] ss:$8 sps:$4 sm:$0xff]  }
  0x4c   :  { %730 = vmatpush1.bf16.msra.mxu0 %v1218_v11  ;;  %687 = vmatpush1.bf16.msra.mxu1 %v1269_v31  ;;  %v65_v3 = vld [vmem:[#allocation2 + $0x28] sm:$0xff]  ;;  %v1272_v5 = vld [vmem:[#allocation4 + $0x224] ss:$8 sps:$4 sm:$0xff]   ;;  %v1270_v9 = vld [vmem:[#allocation4 + $0x220] ss:$8 sps:$4 sm:$0xff]  }
  0x4d   :  { %731 = vmatprep.subr.bf16.mxu0 %v1219_v14  ;;  %688 = vmatprep.subr.bf16.mxu1 %v1273_v32  ;;  %v1321_v6 = vld [vmem:[#allocation4 + $0xd4] ss:$8 sps:$4 sm:$0xff]   ;;  %v72_v7 = vpack.c.bf16 %v65_v3, %v65_v3  ;;  %v1323_v8 = vld [vmem:[#allocation4 + $0xd0] ss:$8 sps:$4 sm:$0xff]   ;;  %v1327_v10 = vld [vmem:[#allocation4 + $0xe4] ss:$8 sps:$4 sm:$0xff]  }
  0x4e   :  { %710 = vmatprep.mubr.bf16.mxu1 %v68_v0  ;;  %v1278_v11 = vld [vmem:[#allocation4 + $0x234] ss:$8 sps:$4 sm:$0xff]   ;;  %v1329_v12 = vld [vmem:[#allocation4 + $0xe0] ss:$8 sps:$4 sm:$0xff]   ;;  %v1276_v13 = vld [vmem:[#allocation4 + $0x230] ss:$8 sps:$4 sm:$0xff]  }
  0x4f   :  { %v1333_v14 = vld [vmem:[#allocation4 + $0xf4] ss:$8 sps:$4 sm:$0xff]   ;;  %v1284_v15 = vld [vmem:[#allocation4 + $0x244] ss:$8 sps:$4 sm:$0xff]   ;;  %v1335_v16 = vld [vmem:[#allocation4 + $0xf0] ss:$8 sps:$4 sm:$0xff]  }
  0x50   :  { %732 = vmatpush1.bf16.msra.mxu0 %v1221_v17  ;;  %689 = vmatpush1.bf16.msra.mxu1 %v1275_v35  ;;  %v60_v17 = vld [vmem:[#allocation2] sm:$0xff]  ;;  %v1290_v20 = vld [vmem:[#allocation4 + $0x254] ss:$8 sps:$4 sm:$0xff]   ;;  %v1360_v61 = vld [vmem:[#allocation6 + $0x70] sm:$0xff]  }
  0x51   :  { %733 = vmatprep.subr.bf16.mxu0 %v1222_v18  ;;  %690 = vmatprep.subr.bf16.mxu1 %v1279_v36  ;;  %v1282_v18 = vld [vmem:[#allocation4 + $0x240] ss:$8 sps:$4 sm:$0xff]   ;;  %v1344_v19 = vld [vmem:[#allocation4 + $0x304] ss:$8 sps:$4 sm:$0xff]   ;;  %v67_v21 = vpack.c.bf16 %v60_v17, %v60_v17  ;;  %v1302_v28 = vld [vmem:[#allocation4 + $0x274] ss:$8 sps:$4 sm:$0xff]  }
  0x52   :  { %v1342_v22 = vld [vmem:[#allocation4 + $0x300] ss:$8 sps:$4 sm:$0xff]   ;;  %v1308_v31 = vld [vmem:[#allocation4 + $0x284] ss:$8 sps:$4 sm:$0xff]  }
  0x53   :  { %v1294_v27 = vld [vmem:[#allocation4 + $0x260] ss:$8 sps:$4 sm:$0xff]   ;;  %v1320_v35 = vld [vmem:[#allocation4 + $0x2a4] ss:$8 sps:$4 sm:$0xff]  }
  0x54   :  { %734 = vmatpush1.bf16.msra.mxu0 %v1224_v23  ;;  %691 = vmatpush1.bf16.msra.mxu1 %v1281_v39  ;;  %v1288_v23 = vld [vmem:[#allocation4 + $0x250] ss:$8 sps:$4 sm:$0xff]   ;;  %v1306_v32 = vld [vmem:[#allocation4 + $0x280] ss:$8 sps:$4 sm:$0xff]   ;;  %v1332_v39 = vld [vmem:[#allocation4 + $0x2c4] ss:$8 sps:$4 sm:$0xff]  }
  0x55   :  { %735 = vmatprep.subr.bf16.mxu0 %v1225_v24  ;;  %692 = vmatprep.subr.bf16.mxu1 %v1285_v40  ;;  %v1296_v24 = vld [vmem:[#allocation4 + $0x264] ss:$8 sps:$4 sm:$0xff]   ;;  %v1318_v36 = vld [vmem:[#allocation4 + $0x2a0] ss:$8 sps:$4 sm:$0xff]  }
  0x56   :  { %v1330_v40 = vld [vmem:[#allocation4 + $0x2c0] ss:$8 sps:$4 sm:$0xff]  }
  0x57   :  { %v1354_v55 = vld [vmem:[#allocation6 + $0x58] sm:$0xff]  }
  0x58   :  { %736 = vmatpush1.bf16.msra.mxu0 %v1227_v26  ;;  %693 = vmatpush1.bf16.msra.mxu1 %v1287_v43  ;;  %v66_v26 = vld [vmem:[#allocation2 + $0x30] sm:$0xff]  ;;  %v1341_v43 = vld [vmem:[#allocation4 + $0x2e4] ss:$8 sps:$4 sm:$0xff]  }
  0x59   :  { %737 = vmatprep.subr.bf16.mxu0 %v1228_v29  ;;  %694 = vmatprep.subr.bf16.mxu1 %v1291_v44  ;;  %v73_v29 = vpack.c.bf16 %v66_v26, %v66_v26  ;;  %v1339_v44 = vld [vmem:[#allocation4 + $0x2e0] ss:$8 sps:$4 sm:$0xff]  }
  0x5a   :  { %v1363_v0 = vld [vmem:[#allocation6 + $0x38] sm:$0xff]  }
  0x5c   :  { %738 = vmatpush1.bf16.msra.mxu0 %v1230_v30  ;;  %695 = vmatpush1.bf16.msra.mxu1 %v1293_v47  ;;  %v1300_v30 = vld [vmem:[#allocation4 + $0x270] ss:$8 sps:$4 sm:$0xff]   ;;  %v64_v47 = vld [vmem:[#allocation2 + $0x20] sm:$0xff] }
  0x5d   :  { %739 = vmatprep.subr.bf16.mxu0 %v1231_v33  ;;  %696 = vmatprep.subr.bf16.mxu1 %v1297_v48  ;;  %v1314_v33 = vld [vmem:[#allocation4 + $0x294] ss:$8 sps:$4 sm:$0xff]   ;;  %v71_v48 = vpack.c.bf16 %v64_v47, %v64_v47 }
  0x60   :  { %740 = vmatpush1.bf16.msra.mxu0 %v1233_v34  ;;  %697 = vmatpush1.bf16.msra.mxu1 %v1299_v51  ;;  %v1312_v34 = vld [vmem:[#allocation4 + $0x290] ss:$8 sps:$4 sm:$0xff]  }
  0x61   :  { %741 = vmatprep.subr.bf16.mxu0 %v1234_v37  ;;  %698 = vmatprep.subr.bf16.mxu1 %v1303_v52  ;;  %v1326_v37 = vld [vmem:[#allocation4 + $0x2b4] ss:$8 sps:$4 sm:$0xff]  }
  0x62   :  { %v1350_v51 = vld [vmem:[#allocation6 + $0x48] sm:$0xff]  }
  0x63   :  { %v1351_v52 = vld [vmem:[#allocation6 + $0x8] sm:$0xff]  }
  0x64   :  { %742 = vmatpush1.bf16.msra.mxu0 %v1236_v38  ;;  %699 = vmatpush1.bf16.msra.mxu1 %v1305_v56  ;;  %v1324_v38 = vld [vmem:[#allocation4 + $0x2b0] ss:$8 sps:$4 sm:$0xff]   ;;  %v1355_v56 = vld [vmem:[#allocation6 + $0x18] sm:$0xff]  }
  0x65   :  { %743 = vmatprep.subr.bf16.mxu0 %v1237_v41  ;;  %700 = vmatprep.subr.bf16.mxu1 %v1309_v57  ;;  %v1338_v41 = vld [vmem:[#allocation4 + $0x2d4] ss:$8 sps:$4 sm:$0xff]  }
  0x66   :  { %v1356_v57 = vld [vmem:[#allocation6 + $0x60] sm:$0xff]  }
  0x68   :  { %744 = vmatpush1.bf16.msra.mxu0 %v1239_v42  ;;  %701 = vmatpush1.bf16.msra.mxu1 %v1311_v60  ;;  %v1336_v42 = vld [vmem:[#allocation4 + $0x2d0] ss:$8 sps:$4 sm:$0xff]  }
  0x69   :  { %745 = vmatprep.subr.bf16.mxu0 %v1240_v45  ;;  %702 = vmatprep.subr.bf16.mxu1 %v1315_v63  ;;  %v1347_v45 = vld [vmem:[#allocation4 + $0x2f4] ss:$8 sps:$4 sm:$0xff]   ;;  %v1362_v63 = vld [vmem:[#allocation6 + $0x78] sm:$0xff]  }
  0x6a   :  { %v1359_v60 = vld [vmem:[#allocation6 + $0x28] sm:$0xff]  }
  0x6c   :  { %746 = vmatpush1.bf16.msra.mxu0 %v1242_v46  ;;  %703 = vmatpush1.bf16.msra.mxu1 %v1317_v2  ;;  %v1345_v46 = vld [vmem:[#allocation4 + $0x2f0] ss:$8 sps:$4 sm:$0xff]  }
  0x6d   :  { %747 = vmatprep.subr.bf16.mxu0 %v1246_v49  ;;  %704 = vmatprep.subr.bf16.mxu1 %v1321_v6  ;;  %v1348_v49 = vld [vmem:[#allocation6 + $0x40] sm:$0xff]  }
  0x70   :  { %748 = vmatpush1.bf16.msra.mxu0 %v1248_v50  ;;  %705 = vmatpush1.bf16.msra.mxu1 %v1323_v8  ;;  %v1349_v50 = vld [vmem:[#allocation6] sm:$0xff]  }
  0x71   :  { %749 = vmatprep.subr.bf16.mxu0 %v1252_v53  ;;  %706 = vmatprep.subr.bf16.mxu1 %v1327_v10  ;;  %v1352_v53 = vld [vmem:[#allocation6 + $0x50] sm:$0xff]  }
  0x74   :  { %750 = vmatpush1.bf16.msra.mxu0 %v1254_v54  ;;  %707 = vmatpush1.bf16.msra.mxu1 %v1329_v12  ;;  %v1353_v54 = vld [vmem:[#allocation6 + $0x10] sm:$0xff]   ;;  %v172_v12 = vld [vmem:[%s1527_s2] sm:$0x3] }
  0x75   :  { %760 = vmatprep.subr.bf16.mxu0 %v1260_v58  ;;  %708 = vmatprep.subr.bf16.mxu1 %v1333_v14  ;;  %v1357_v58 = vld [vmem:[#allocation6 + $0x20] sm:$0xff]  }
  0x77   :  { %752 = vmatmul.mubr.bf16.vlgmr.msra.gmra.mrb[0].mxu0 %v69_v59  ;;  %v1358_v59 = vld [vmem:[#allocation6 + $0x68] sm:$0xff]  }
  0x78   :  { %761 = vmatpush1.bf16.msra.mxu0 %v1258_v62  ;;  %792 = vmatprep.mubr.bf16.mxu0 %v72_v7  ;;  %v1361_v62 = vld [vmem:[#allocation6 + $0x30] sm:$0xff]  }
  0x79   :  { %762 = vmatprep.subr.bf16.mxu0 %v1266_v1  ;;  %709 = vmatpush1.bf16.msra.mxu1 %v1335_v16 }
  0x7a   :  { %801 = vmatprep.subr.bf16.mxu1 %v1344_v19 }
  0x7c   :  { %763 = vmatpush1.bf16.msra.mxu0 %v1264_v4  ;;  %711 = vmatmul.mubr.bf16.vlgmr.msra.gmra.mrb[0].mxu1 %v67_v21 }
  0x7d   :  { %764 = vmatprep.subr.bf16.mxu0 %v1272_v5  ;;  %802 = vmatpush1.bf16.msra.mxu1 %v1342_v22 }
  0x7e   :  { %833 = vmatprep.mubr.bf16.mxu1 %v1449_v25  ;;  %1161 = vmatprep.subr.bf16.mxu1 %v1348_v49 }
  0x80   :  { %765 = vmatpush1.bf16.msra.mxu0 %v1270_v9  ;;  %v174_v9 = vlaneseq }
  0x81   :  { %766 = vmatprep.subr.bf16.mxu0 %v1278_v11 }
  0x82   :  { %v175_v10 = vshrl.u32 %v174_v9, 7 }
  0x84   :  { %767 = vmatpush1.bf16.msra.mxu0 %v1276_v13  ;;  %1143 = vmatmul.mubr.msk.bf16.vlgmr.msra.gmra.mrb[4].mxu1 %vm674_vm0, %v73_v29  ;;  %v176_v11 = vsub.s32 0, %v175_v10  ;;  %v180_v13 = vsub.s32 1, %v175_v10 }
  0x85   :  { %768 = vmatprep.subr.bf16.mxu0 %v1284_v15  ;;  %1162 = vmatpush3.bf16.msra.mxu1 %v1349_v50 }
  0x86   :  { %1163 = vmatprep.subr.bf16.mxu1 %v1350_v51  ;;  %v177_v14 = vrot.slane %v172_v12, %v176_v11  ;;  %v181_v15 = vrot.slane %v172_v12, %v180_v13 }
  0x88   :  { %769 = vmatpush1.bf16.msra.mxu0 %v1282_v18 }
  0x89   :  { %770 = vmatprep.subr.bf16.mxu0 %v1290_v20  ;;  %1164 = vmatpush3.bf16.msra.mxu1 %v1351_v52 }
  0x8a   :  { %1165 = vmatprep.subr.bf16.mxu1 %v1352_v53 }
  0x8c   :  { %771 = vmatpush1.bf16.msra.mxu0 %v1288_v23 }
  0x8d   :  { %772 = vmatprep.subr.bf16.mxu0 %v1296_v24  ;;  %1166 = vmatpush3.bf16.msra.mxu1 %v1353_v54 }
  0x8e   :  { %1167 = vmatprep.subr.bf16.mxu1 %v1354_v55 }
  0x90   :  { %773 = vmatpush1.bf16.msra.mxu0 %v1294_v27 }
  0x91   :  { %774 = vmatprep.subr.bf16.mxu0 %v1302_v28  ;;  %1168 = vmatpush3.bf16.msra.mxu1 %v1355_v56 }
  0x92   :  { %1169 = vmatprep.subr.bf16.mxu1 %v1356_v57 }
  0x94   :  { %775 = vmatpush1.bf16.msra.mxu0 %v1300_v30 }
  0x95   :  { %776 = vmatprep.subr.bf16.mxu0 %v1308_v31  ;;  %1170 = vmatpush3.bf16.msra.mxu1 %v1357_v58 }
  0x96   :  { %1171 = vmatprep.subr.bf16.mxu1 %v1358_v59 }
  0x98   :  { %777 = vmatpush1.bf16.msra.mxu0 %v1306_v32 }
  0x99   :  { %778 = vmatprep.subr.bf16.mxu0 %v1314_v33  ;;  %1172 = vmatpush3.bf16.msra.mxu1 %v1359_v60 }
  0x9a   :  { %1173 = vmatprep.subr.bf16.mxu1 %v1360_v61 }
  0x9c   :  { %779 = vmatpush1.bf16.msra.mxu0 %v1312_v34 }
  0x9d   :  { %780 = vmatprep.subr.bf16.mxu0 %v1320_v35  ;;  %1174 = vmatpush3.bf16.msra.mxu1 %v1361_v62 }
  0x9e   :  { %1175 = vmatprep.subr.bf16.mxu1 %v1362_v63 }
  0xa0   :  { %781 = vmatpush1.bf16.msra.mxu0 %v1318_v36 }
  0xa1   :  { %782 = vmatprep.subr.bf16.mxu0 %v1326_v37  ;;  %1176 = vmatpush3.bf16.msra.mxu1 %v1363_v0 }
  0xa4   :  { %783 = vmatpush1.bf16.msra.mxu0 %v1324_v38  ;;  %v1144_v38 = vld [vmem:[%s1529_s4] ss:$0 sm:$0xff] }
  0xa5   :  { %784 = vmatprep.subr.bf16.mxu0 %v1332_v39 }
  0xa8   :  { %785 = vmatpush1.bf16.msra.mxu0 %v1330_v40 }
  0xa9   :  { %786 = vmatprep.subr.bf16.mxu0 %v1338_v41 }
  0xac   :  { %787 = vmatpush1.bf16.msra.mxu0 %v1336_v42 }
  0xad   :  { %788 = vmatprep.subr.bf16.mxu0 %v1341_v43 }
  0xb0   :  { %789 = vmatpush1.bf16.msra.mxu0 %v1339_v44 }
  0xb1   :  { %790 = vmatprep.subr.bf16.mxu0 %v1347_v45 }
  0xb4   :  { %791 = vmatpush1.bf16.msra.mxu0 %v1345_v46 }
  0xb7   :  { %793 = vmatmul.mubr.bf16.vlgmr.msra.gmra.mrb[0].mxu0 %v71_v48 }
 0x14f   :  { %v712_v1 = vpop.f32.mrb[0].mxu1 }
 0x150   :  { %v714_v2 = vpop.f32.mrb[1].mxu1  ;;  %v713_v16 = vadd.f32 %v712_v1, %v177_v14 }
 0x151   :  { %v716_v3 = vpop.f32.mrb[2].mxu1  ;;  %v715_v17 = vadd.f32 %v714_v2, %v181_v15 }
 0x152   :  { %v717_v4 = vpop.f32.mrb[3].mxu1 }
 0x157   :  { %v835_v5 = vpop.f32.mrb[4].mxu1 }
 0x158   :  { %v837_v6 = vpop.f32.mrb[5].mxu1 }
 0x159   :  { %v839_v7 = vpop.f32.mrb[6].mxu1 }
 0x15a   :  { %v840_v8 = vpop.f32.mrb[7].mxu1 }
 0x18a   :  { %v794_v18 = vpop.f32.mrb[0].mxu0 }
 0x18b   :  { %v1184_v19 = vadd.f32 %v794_v18, %v713_v16  ;;  %v796_v20 = vpop.f32.mrb[1].mxu0 }
 0x18c   :  { %v1187_v21 = vadd.f32 %v796_v20, %v715_v17  ;;  %v798_v22 = vpop.f32.mrb[2].mxu0 }
 0x18d   :  { %v1185_v23 = vadd.f32 %v1184_v19, %v835_v5  ;;  %v799_v24 = vpop.f32.mrb[3].mxu0 }
 0x18e   :  { %v1188_v25 = vadd.f32 %v1187_v21, %v837_v6 }
 0x18f   :  { %v842_v26 = vmul.f32 0.5, %v1185_v23 }
 0x190   :  { %v843_v27 = vmul.f32 0.5, %v1188_v25 }
 0x191   :  { %1364 = vtanh.f32 %v842_v26 }
 0x192   :  { %1366 = vtanh.f32 %v843_v27 }
 0x19b   :  { %v1365_v28 = vpop.eup %1364 }
 0x19c   :  { %v1367_v29 = vpop.eup %1366  ;;  %v846_v30 = vadd.f32 1.0, %v1365_v28 }
 0x19d   :  { %v847_v31 = vadd.f32 1.0, %v1367_v29 }
 0x19e   :  { %v848_v32 = vmul.f32 0.5, %v846_v30 }
 0x19f   :  { %v849_v33 = vmul.f32 0.5, %v847_v31 }
 0x1a0   :  { %v850_v35 = vpack.c.bf16 %v848_v32, %v848_v32 }
 0x1a1   :  { %v851_v34 = vpack.c.bf16 %v849_v33, %v849_v33 }
 0x1a3   :  { %1019 = vmatprep.mubr.bf16.mxu1 %v851_v34 }
 0x1a4   :  { %1020 = vmatmul.mubr.bf16.vlgmr.msra.gmra.mrb[8].mxu1 %v850_v35 }
 0x277   :  { %v1177_v36 = vpop.f32.mrb[8].mxu1 }
 0x278   :  { %v1178_v37 = vpop.f32.mrb[9].mxu1 }
 0x279   :  { %v1179_v39 = vadd.f32 %v1178_v37, %v1177_v36  ;;  %v1180_v40 = vpop.f32.mrb[10].mxu1 }
 0x27a   :  { %v1181_v41 = vpop.f32.mrb[11].mxu1 }
 0x27b   :  { %v1022_v42 = vadd.f32 %v1179_v39, %v1144_v38 }
 0x27d   :  { %1027 = vmax.xlane.f32.xlu0 %v1022_v42 }
 0x30a   :  { %v1028_v43 = vpop.xlane.xlu0 %1027 }
 0x30b   :  { %v1029_v44 = vsub.f32 %v1022_v42, %v1028_v43 }
 0x30d   :  { %v1030_v45 = vmul.f32 1.442695, %v1029_v44 }
 0x30f   :  { %1368 = vpow2.f32 %v1030_v45 }
 0x319   :  { %v1369_v46 = vpop.eup %1368 }
 0x31a   :  { %1032 = vadd.xlane.f32.xlu0 %v1369_v46 }
 0x3a7   :  { %v1033_v47 = vpop.xlane.xlu0 %1032 }
 0x3a8   :  { %1370 = vrcp.f32 %v1033_v47 }
 0x3b2   :  { %v1371_v48 = vpop.eup %1370 }
 0x3b3   :  { %v1036_v49 = vmul.f32 %v1371_v48, %v1369_v46 }
 0x3b5   :  { %v1037_v50 = vpack.c.bf16 %v1036_v49, %v1036_v49 }
 0x3b7   :  { %1038 = vst [vmem:[%s1530_s5] sm:$0xf] %v1037_v50 }
 0x3b8   :  { %1043 = vsyncpa [#allocation3], 1 }
 0x3b9   :  { %1044 = vsyncpa [#allocation5], 1 }

</bundles_post_ra>
